<compile_context>
chip_gen: v5e
topology: v5e:2x2
jax: 0.10.0
libtpu: 0.0.40
codegen_flags: <defaults>
</compile_context>

<pallas_src>
import jax
import jax.numpy as jnp
from jax.experimental import pallas as pl
from jax.experimental.pallas import tpu as pltpu


# ------------------------------ Pallas kernel -------------------------------

def dual_embedding_kernel(idx_ref, tcat_ref, o1_ref, o2_ref):
    """idx_ref: (TN, 1) int32; tcat_ref: (V, 2E) f32; o*_ref: (TN, E) f32."""
    idx = idx_ref[...]                                      # (TN, 1)
    tn = idx.shape[0]
    v = tcat_ref.shape[0]
    e = o1_ref.shape[1]
    # One-hot selection matrix built on the VPU, both gathers done as a
    # single MXU matmul against the concatenated table (exact: each row
    # selects one table row with weight 1.0).
    cols = jax.lax.broadcasted_iota(jnp.int32, (tn, v), 1)  # (TN, V)
    onehot = (cols == idx).astype(jnp.float32)              # exact 0/1 rows
    fused = jnp.dot(onehot, tcat_ref[...],
                    preferred_element_type=jnp.float32)     # (TN, 2E)
    o1_ref[...] = fused[:, :e]
    o2_ref[...] = fused[:, e:]


# -------------------------------- wrapper ------------------------------------

def _round_up(n, m):
    return ((n + m - 1) // m) * m


def _pick_tile(n, block_rows, min_steps=4):
    """Row-tile: multiple of 8, capped at block_rows, and small enough that
    moderate N still yields >= min_steps grid steps (v7x megacore sharding)."""
    tn = _round_up(pl.cdiv(max(n, 1), min_steps), 8)
    return max(8, min(block_rows, tn))


def pallas_dual_embedding(idx_flat, table1, table2, *, block_rows=1024):
    """idx_flat: (N,) int; table1/table2: (V, E) f32 -> two (N, E) f32 arrays."""
    n = idx_flat.shape[0]
    v, e = table1.shape

    # Concatenated table: one (V, 2E) VMEM-resident operand, one matmul.
    tcat = jnp.concatenate([table1, table2], axis=1)        # (V, 2E)

    idx2d = idx_flat.reshape(n, 1).astype(jnp.int32)        # no padding
    tn = _pick_tile(n, block_rows)
    grid = (pl.cdiv(n, tn),)

    out1, out2 = pl.pallas_call(
        dual_embedding_kernel,
        out_shape=(jax.ShapeDtypeStruct((n, e), jnp.float32),
                   jax.ShapeDtypeStruct((n, e), jnp.float32)),
        grid=grid,
        in_specs=[pl.BlockSpec((tn, 1), lambda i: (i, 0)),      # indices: tiled rows
                  pl.BlockSpec((v, 2 * e), lambda i: (0, 0))],  # fused table: resident
        out_specs=(pl.BlockSpec((tn, e), lambda i: (i, 0)),
                   pl.BlockSpec((tn, e), lambda i: (i, 0))),
        compiler_params=pltpu.CompilerParams(
            dimension_semantics=("parallel",)),
    )(idx2d, tcat)
    return out1, out2


# ----------------------------- model (forward) --------------------------------

def init_params(key, num_embeddings=16, embedding_dim=32):
    """PyTorch nn.Embedding default init: weight ~ N(0, 1)."""
    k1, k2 = jax.random.split(key)
    return dict(
        emb1_w=jax.random.normal(k1, (num_embeddings, embedding_dim),
                                 dtype=jnp.float32),
        emb2_w=jax.random.normal(k2, (num_embeddings, embedding_dim),
                                 dtype=jnp.float32),
    )


def emb_model_wrapper_forward(params, x):
    """x: integer index tensor of any shape -> torch-identical nested dict."""
    orig_shape = x.shape
    e = params["emb1_w"].shape[1]
    idx_flat = x.reshape(-1)
    e1, e2 = pallas_dual_embedding(idx_flat, params["emb1_w"], params["emb2_w"])
    return {
        "key": {
            "emb1": e1.reshape(orig_shape + (e,)),
            "emb2": e2.reshape(orig_shape + (e,)),
        }
    }


# ---------------------------------- main --------------------------------------

if __name__ == "__main__":
    key = jax.random.PRNGKey(0)
    pkey, xkey = jax.random.split(key)

    params = init_params(pkey, num_embeddings=16, embedding_dim=32)
    # Small index input consistent with nn.Embedding(16, 32): batch=2, seq=8.
    x = jax.random.randint(xkey, (2, 8), 0, 16, dtype=jnp.int32)

    out = jax.block_until_ready(emb_model_wrapper_forward(params, x))

    emb1 = out["key"]["emb1"]
    emb2 = out["key"]["emb2"]
    assert emb1.shape == (2, 8, 32), emb1.shape
    assert emb2.shape == (2, 8, 32), emb2.shape

    # Reference: plain JAX gather must match exactly (0/1 one-hot matmul is exact).
    ref1 = params["emb1_w"][x]
    ref2 = params["emb2_w"][x]
    assert bool(jnp.all(emb1 == ref1)), "emb1 mismatch"
    assert bool(jnp.all(emb2 == ref2)), "emb2 mismatch"

    print("KERNEL_OK")
</pallas_src>

<mosaic_0001>
module attributes {stable_mosaic.version = 11 : i64} {
  func.func @dual_embedding_kernel(%arg0: i32, %arg1: memref<8x1xi32, #tpu.memory_space<vmem>>, %arg2: memref<16x64xf32, #tpu.memory_space<vmem>>, %arg3: memref<8x32xf32, #tpu.memory_space<vmem>>, %arg4: memref<8x32xf32, #tpu.memory_space<vmem>>) attributes {dimension_semantics = [#tpu.dimension_semantics<parallel>], iteration_bounds = array<i64: 2>, scalar_prefetch = 0 : i64, scratch_operands = 0 : i64, tpu.core_type = #tpu.core_type<tc>, window_params = [{transform_indices = @transform_0, window_bounds = array<i64: 8, 1>}, {pipeline_mode = #tpu.pipeline_mode<synchronous>, transform_indices = @transform_1, window_bounds = array<i64: 16, 64>}, {transform_indices = @transform_2, window_bounds = array<i64: 8, 32>}, {transform_indices = @transform_3, window_bounds = array<i64: 8, 32>}]} {
    %c0 = arith.constant 0 : index
    %c0_0 = arith.constant 0 : index
    %0 = vector.load %arg1[%c0, %c0_0] : memref<8x1xi32, #tpu.memory_space<vmem>>, vector<8x1xi32>
    %1 = tpu.iota {dimensions = array<i32: 1>} : vector<8x16xi32>
    %2 = vector.broadcast %0 : vector<8x1xi32> to vector<8x16xi32>
    %3 = arith.cmpi eq, %1, %2 : vector<8x16xi32>
    %4 = arith.extui %3 : vector<8x16xi1> to vector<8x16xi32>
    %5 = arith.sitofp %4 : vector<8x16xi32> to vector<8x16xf32>
    %c0_1 = arith.constant 0 : index
    %c0_2 = arith.constant 0 : index
    %6 = vector.load %arg2[%c0_1, %c0_2] : memref<16x64xf32, #tpu.memory_space<vmem>>, vector<16x64xf32>
    %cst = arith.constant dense<0.000000e+00> : vector<8x64xf32>
    %7 = tpu.matmul %5, %6, %cst {dimension_numbers = #tpu.dot_dimension_numbers<[1], [0], [0], [1], [0, 0, 1, 1], [], []>} : vector<8x16xf32>, vector<16x64xf32>, vector<8x64xf32> -> vector<8x64xf32>
    %8 = vector.extract_strided_slice %7 {offsets = [0, 0], sizes = [8, 32], strides = [1, 1]} : vector<8x64xf32> to vector<8x32xf32>
    %c0_3 = arith.constant 0 : index
    %c0_4 = arith.constant 0 : index
    %9 = vector.load %arg3[%c0_3, %c0_4] : memref<8x32xf32, #tpu.memory_space<vmem>>, vector<8x32xf32>
    tpu.vector_store %arg3[%c0_3, %c0_4], %8 {strides = array<i32>} : memref<8x32xf32, #tpu.memory_space<vmem>>, vector<8x32xf32>,
    %10 = vector.extract_strided_slice %7 {offsets = [0, 32], sizes = [8, 32], strides = [1, 1]} : vector<8x64xf32> to vector<8x32xf32>
    %c0_5 = arith.constant 0 : index
    %c0_6 = arith.constant 0 : index
    %11 = vector.load %arg4[%c0_5, %c0_6] : memref<8x32xf32, #tpu.memory_space<vmem>>, vector<8x32xf32>
    tpu.vector_store %arg4[%c0_5, %c0_6], %10 {strides = array<i32>} : memref<8x32xf32, #tpu.memory_space<vmem>>, vector<8x32xf32>,
    return
  }
  func.func @transform_0(%arg0: i32) -> (i32, i32) {
    %c0_i32 = arith.constant 0 : i32
    %c0_i32_0 = arith.constant 0 : i32
    return %arg0, %c0_i32 : i32, i32
  }
  func.func @transform_1(%arg0: i32) -> (i32, i32) {
    %c0_i32 = arith.constant 0 : i32
    %c0_i32_0 = arith.constant 0 : i32
    %c0_i32_1 = arith.constant 0 : i32
    return %c0_i32, %c0_i32_0 : i32, i32
  }
  func.func @transform_2(%arg0: i32) -> (i32, i32) {
    %c0_i32 = arith.constant 0 : i32
    %c0_i32_0 = arith.constant 0 : i32
    return %arg0, %c0_i32 : i32, i32
  }
  func.func @transform_3(%arg0: i32) -> (i32, i32) {
    %c0_i32 = arith.constant 0 : i32
    %c0_i32_0 = arith.constant 0 : i32
    return %arg0, %c0_i32 : i32, i32
  }
}

</mosaic_0001>

<bundles_post_ra>
// kernel: tpu_custom_call.1
= control target key start
LH: loop header
LB: loop body
LE: loop exit
PB: predicated region body
PF: predicated region fallthrough
CT: control target
= control target key end

     0   :  { %9 = vsyncpa [#allocation3], 0  ;;  %s639_s0 = inlined_call_operand.vmem [shape: s32[16,1], index: 0, kind: input, shape index: {}]   ;;  %s640_s1 = inlined_call_operand.vmem [shape: f32[16,64], index: 1, kind: input, shape index: {}]   ;;  %s641_s2 = inlined_call_operand.hbm [shape: f32[16,32], index: 2, kind: output, shape index: {0}]   ;;  %s642_s3 = inlined_call_operand.hbm [shape: f32[16,32], index: 3, kind: output, shape index: {1}]  }
   0x1   :  { %11 = vsyncpa [#allocation3 + $0x1], 0 }
   0x2   :  { %12 = vsyncpa [#allocation5], 0 }
   0x3   :  { %14 = vsyncpa [#allocation5 + $0x1], 0  ;;  %s528_s12 = smov 0   ;;  %s530_s13 = smov 0  }
   0x4   :  { %s532_s14 = smov 0   ;;  %s534_s15 = smov 0  }
   0x5 LB: > { %s549_s16 = sadd.s32 4294967295, %s503_s15   ;;  %s346_s17 = sadd.s32 4294967294, %s503_s15   ;;  %s503_s15 = sphi %s534_s15, %s648_s15   ;;  %s499_s14 = sphi %s532_s14, %s647_s14   ;;  %s495_s13 = sphi %s530_s13, %s646_s13   ;;  %s491_s12 = sphi %s528_s12, %s645_s12  }
   0x6   : > { %s553_s18 = sadd.s32 1, %s503_s15   ;;  %s74_s19 = sadd.s32 1, %s499_s14 }
   0x7   : > { %s71_s20 = ssub.s32 %s503_s15, %s553_s18  ;;  %p84_p0 = scmp.ne.s32.totalorder %s499_s14, %s495_s13 }
   0x8   : > { %p72_p1 = scmp.eq.s32.totalorder %s71_s20, 0  ;;  %p85_p2 = scmp.eq.s32.totalorder %s549_s16, 1 }
   0x9   : > { %p90_p3 = scmp.ne.s32.totalorder %s495_s13, %s491_s12  ;;  %p91_p4 = scmp.eq.s32.totalorder %s346_s17, 1 }
   0xa   : > { %s564_s21 = scalar_select %p72_p1, %s499_s14, %s74_s19  }
   0xb   : > { %p566_p5 = por %p85_p2, %p84_p0  ;;  %p570_p6 = por %p91_p4, %p90_p3 }
   0xc   : > { %p349_p7 = scmp.ge.s32.totalorder %s503_s15, 1  ;;  %p145_p8 = scmp.lt.s32.totalorder %s503_s15, 3 }
   0xe   : > { %p146_p9 = pnand %p349_p7, %p145_p8 }
   0xf   : > { %p173_p10 = scmp.lt.s32.totalorder (!%p146_p9), %s549_s16, 1  ;;  %s588_s6 = sand.u32 (!%p146_p9), 1, %s495_s13  }
  0x10   : > { %149 = sbr.rel (%p146_p9) target bundleno = 387 (0x183), region = 28  ;;  %s357_s7 = sshll.u32 (!%p146_p9), %s549_s16, 3 }
  0x11   : > { %s350_s8 = sshll.u32 (!%p146_p9), %s588_s6, 3  ;;  %s235_s11 = scalar_lea.hbm (!%p146_p9), %s641_s2, %s357_s7 }
  0x12   : > { %s165_s17 = scalar_lea.vmem (!%p146_p9), [#allocation2], %s350_s8  ;;  %s239_s20 = sshll.u32 (!%p146_p9), %s235_s11, 4  ;;  %s240_s20 = int_to_ptr.hbm [resolvable:$true] %s239_s20 }
  0x13   : > { %s237_s19 = sshll.u32 (!%p146_p9), %s165_s17, 4  ;;  %s507_s24 = smov (!%p146_p9), 96   ;;  %s238_s19 = int_to_ptr.vmem [resolvable:$true] %s237_s19 }
  0x14   : > { %s220_s25 = scalar_lea.sflag (!%p146_p9), [#allocation3], %s588_s6  ;;  %s429_s29 = scalar_lea.hbm (!%p146_p9), %s641_s2, 16 }
  0x15   : > { %v187_v0 = vld [vmem:[%s640_s1 + $0x8] sm:$0xff]  ;;  %v505_v1 = vmov 0   ;;  %s174_s26 = scalar_select %p173_p10, %s549_s16, 1  ;;  %v186_v3 = vld [vmem:[%s640_s1] sm:$0xff]  ;;  %v178_v4 = vlaneseq  ;;  %vm188_vm0 = vcmask 130048   ;;  %v506_v7 = vmov 0.0  }
  0x16   : > { %408 = vset.pattern.permute.xlu0 %v505_v1  ;;  %206 = vmatpush.msra.mxu0 %v187_v0  ;;  %vm212_vm2 = vcmask 261120  }
  0x17   : > { %s352_s27 = sshll.u32 %s174_s26, 3  ;;  %v179_v5 = vand.u32 127, %v178_v4  ;;  %s423_s26 = sshra.s32 %s240_s20, 4  ;;  %s424_s26 = int_to_ptr.hbm [resolvable:$true] %s423_s26 }
  0x18   : > { %s176_s30 = scalar_lea.vmem %s639_s0, %s352_s27  ;;  %207 = vmatpush.msra.mxu0 %v186_v3  ;;  %s425_s16 = scalar_lea.hbm %s424_s26, 8 }
  0x19   : > { %v177_v2 = vld [vmem:[%s176_s30] sm:$0xff]  ;;  %p426_p11 = scmp.ne.s32.totalorder %s424_s26, %s425_s16  ;;  %p430_p0 = scmp.lt.s32.totalorder %s424_s26, %s641_s2 }
  0x1a   : > { %181 = vperm.xlu0 %408, %v177_v2   ;;  %p431_p1 = scmp.lt.s32.totalorder %s429_s29, %s425_s16 }
  0x1b   : > { %p427_p12 = pnand %p426_p11, %p566_p5 }
  0x1c   : > { %p432_p2 = por %p431_p1, %p430_p0 }
  0x1d   : > { %p428_p13 = pneg %p427_p12 }
  0x1f   : > { %p433_p3 = pnand %p432_p2, %p428_p13 }
  0x8c   : > { %v182_v6 = vpop.permute.xlu0 %181 }
  0x8d   : > { %vm183_vm1 = vcmp.eq.s32.totalorder %v179_v5, %v182_v6 }
  0x8e   : > { %v353_v8 = vsel %vm183_vm1, 1.0, %v506_v7 }
  0x8f   : > { %354 = vmatmul.msk.f32.vlgmr.msra.gmra.mxu0 %vm188_vm0, %v353_v8 }
 0x10c   : > { %v209_v9 = vpop.f32.mrf.mxu0 }
 0x10d   : > { %213 = vst.msk [vmem:[%s165_s17] sm:$0xff] %vm212_vm2, %v209_v9  ;;  %215 = vrot.lane.b32.xlu0 %v209_v9, %s507_s24 }
 0x10e   : > { %436 = shalt.err (!%p433_p3)
}
 0x10f   : > { %361 = dma.vmem_to_hbm [thread:$0]  (%p566_p5), %s238_s19, 128, %s240_s20, %s220_s25  }
 0x110   : > { %s249_s10 = scalar_lea.hbm %s642_s3, %s357_s7  ;;  %s172_s11 = scalar_lea.vmem [#allocation4], %s350_s8 }
 0x111   : > { %s251_s17 = sshll.u32 %s172_s11, 4  ;;  %s253_s24 = sshll.u32 %s249_s10, 4  ;;  %s252_s17 = int_to_ptr.vmem [resolvable:$true] %s251_s17  ;;  %s254_s24 = int_to_ptr.hbm [resolvable:$true] %s253_s24 }
 0x112   : > { %s225_s26 = scalar_lea.sflag [#allocation5], %s588_s6  ;;  %s451_s16 = sshra.s32 %s254_s24, 4  ;;  %s452_s16 = int_to_ptr.hbm [resolvable:$true] %s451_s16 }
 0x113   : > { %s453_s27 = scalar_lea.hbm %s452_s16, 8  ;;  %s457_s7 = scalar_lea.hbm %s642_s3, 16 }
 0x114   : > { %p454_p4 = scmp.ne.s32.totalorder %s452_s16, %s453_s27  ;;  %p458_p9 = scmp.lt.s32.totalorder %s452_s16, %s642_s3 }
 0x115   : > { %p459_p10 = scmp.lt.s32.totalorder %s457_s7, %s453_s27 }
 0x116   : > { %p455_p7 = pnand %p454_p4, %p566_p5 }
 0x117   : > { %p460_p11 = por %p459_p10, %p458_p9 }
 0x118   : > { %p456_p8 = pneg %p455_p7 }
 0x11a   : > { %p461_p12 = pnand %p460_p11, %p456_p8 }
 0x17f   : > { %v216_v10 = vpop.permute.xlu0 %215 }
 0x180   : > { %218 = vst.msk [vmem:[%s172_s11] sm:$0xff] %vm212_vm2, %v216_v10 }
 0x181   : > { %464 = shalt.err (!%p461_p12)
}
 0x182   : > { %362 = dma.vmem_to_hbm [thread:$0]  (%p566_p5), %s252_s17, 128, %s254_s24, %s225_s26  }
 0x183 PF: > { %p372_p13 = scmp.ge.s32.totalorder %s503_s15, 2  ;;  %s265_s6 = sand.u32 1, %s491_s12  }
 0x184   : > { %s266_s28 = scalar_lea.sflag [#allocation3], %s265_s6 }
 0x185   : > { %p366_p0 = pnand %p372_p13, %p570_p6 }
 0x187   : > { %p367_p1 = pneg %p366_p0 }
 0x189   : > { %482 = dma.done.wait (%p367_p1), %s266_s28, 128  }
 0x18a   : > { %484 = vsyncadd (%p367_p1), %s266_s28, 4294967168  ;;  %s276_s29 = scalar_lea.sflag [#allocation5], %s265_s6 }
 0x18b   : > { %486 = dma.done.wait (%p367_p1), %s276_s29, 128  }
 0x18c   : > { %488 = vsyncadd (%p367_p1), %s276_s29, 4294967168  ;;  %p17_p5 = scmp.ge.s32.totalorder %s553_s18, 4   ;;  %s645_s12 = smov %s495_s13 }
 0x18d   : > { %s646_s13 = smov %s499_s14  ;;  %s647_s14 = smov %s564_s21 }
 0x18e   : > { %s648_s15 = smov %s553_s18  ;;  %19 = sbr.rel (!%p17_p5) target bundleno = 5 (0x5), region = 80 }
 0x193   :  { %282 = vsyncpa [#allocation3], 1 }
 0x194   :  { %284 = vsyncpa [#allocation3 + $0x1], 1 }
 0x195   :  { %285 = vsyncpa [#allocation5], 1 }
 0x196   :  { %287 = vsyncpa [#allocation5 + $0x1], 1 }

</bundles_post_ra>
